<compile_context>
chip_gen: v7x
topology: tpu7x:2x2x1
jax: 0.10.0
libtpu: 0.0.40
codegen_flags: <defaults>
</compile_context>

<pallas_src>
import jax
import jax.numpy as jnp
from jax import lax
from jax.experimental import pallas as pl
from jax.experimental.pallas import tpu as pltpu


# -----------------------------------------------------------------------------
# Fused Pallas kernel: the whole stage graph for one batch element
# -----------------------------------------------------------------------------
def _stage_kernel(coef_ref, x_ref, r1_ref, m1_ref, sh1_ref,
                  r23_ref, m2_ref, sh2_ref, m3_ref, sh3_ref, o_ref):
    """Fused stage graph.

    coef_ref: (3,) SMEM   sigmoid'd aggregator weights [node2_w0, node3_w0, node3_w1]
    x_ref:    (H, W*C_in) merged master input
    rX_ref:   (3, rows_out, rows_in)   0/1 row shift / stride matrices
    mX_ref:   (3, W_in*C_in, W_out*C_out) folded depthwise+pointwise+BN-scale
    shX_ref:  (1, W_out*C_out)         folded BN shift (lane-dense)
    o_ref:    (Ho, Wo*C)               master-output (mean of nodes 2 and 3)
    """

    def sep_conv(z, r_ref, m_ref, sh_ref):
        # z: (rows_in, W_in*C_in) pre-activation in merged lane-dense layout.
        z = jnp.maximum(z, 0.0)                       # ReLU (VPU, lane-dense)
        y = sh_ref[...]                               # (1, W_out*C_out) BN shift
        for d in range(3):                            # kernel-row offsets -1, 0, +1
            zr = jnp.dot(r_ref[d], z, preferred_element_type=jnp.float32)
            y = y + jnp.dot(zr, m_ref[d], preferred_element_type=jnp.float32)
        return y                                      # (rows_out, W_out*C_out)

    x = x_ref[...]                                          # (H, W*C_in)
    # node 1: sub-input TripleUnit, stride 2 (ReLU on the raw master input).
    h1 = sep_conv(x, r1_ref, m1_ref, sh1_ref)               # (Ho, Wo*C)
    # node 2: weighted Aggregator over [h1] + TripleUnit stride 1.
    h2 = sep_conv(coef_ref[0] * h1, r23_ref, m2_ref, sh2_ref)
    # node 3: weighted Aggregator over [h1, h2] + TripleUnit stride 1.
    h3 = sep_conv(coef_ref[1] * h1 + coef_ref[2] * h2, r23_ref, m3_ref, sh3_ref)
    # node 4 (master output): unweighted mean Aggregator, fused into the store.
    o_ref[...] = 0.5 * (h2 + h3)


# -----------------------------------------------------------------------------
# Host-side parameter folding (weights only; done once per call)
# -----------------------------------------------------------------------------
def _fold_sep_conv(w_dw, w_pw, bn, W_in, stride):
    """Fold depthwise 3x3 taps (+W zero padding, +stride-2 column decimation),
    the 1x1 pointwise conv and the eval-mode BatchNorm scale into three
    (W_in*C_in, W_out*C_out) matrices (one per kernel-row offset), plus a
    lane-dense BN shift row."""
    gamma, beta, mean, var, eps = bn
    scale = gamma * lax.rsqrt(var + eps)               # (C_out,)
    shift = beta - mean * scale                        # (C_out,)

    c_in = w_dw.shape[-1]
    c_out = w_pw.shape[-1]
    w_out = W_in // stride
    pw = w_pw * scale[None, :]                         # BN scale folded, (C_in, C_out)

    w_idx = jnp.arange(W_in)[:, None]                  # input column  w
    wo_idx = jnp.arange(w_out)[None, :]                # output column wo
    dwc = w_idx - stride * wo_idx                      # column offset, (W_in, W_out)
    valid = (dwc >= -1) & (dwc <= 1)                   # inside the 3x3 window
    kw = jnp.clip(dwc + 1, 0, 2)                       # depthwise tap column index

    mats = []
    for kh in range(3):                                # kernel row 0..2 (offset kh-1)
        tap = jnp.where(valid[..., None], w_dw[kh][kw], 0.0)     # (W_in, W_out, C_in)
        m = jnp.einsum('awc,co->acwo', tap, pw)                  # (W_in, C_in, W_out, C_out)
        mats.append(m.reshape(W_in * c_in, w_out * c_out))
    m_stack = jnp.stack(mats, axis=0).astype(jnp.float32)        # (3, Win*Cin, Wout*Cout)
    sh = jnp.tile(shift, (w_out,)).reshape(1, w_out * c_out).astype(jnp.float32)
    return m_stack, sh


def _row_shift_mats(H_in, stride):
    """0/1 matrices R_d (d = -1, 0, +1): (R_d @ z)[r, :] == z[stride*r + d, :],
    with all-zero rows where stride*r + d falls outside [0, H_in) -- this
    realises the H zero padding and the stride-2 row decimation."""
    h_out = H_in // stride
    r_out = jnp.arange(h_out)[:, None]
    r_in = jnp.arange(H_in)[None, :]
    mats = [(r_in == stride * r_out + d).astype(jnp.float32) for d in (-1, 0, 1)]
    return jnp.stack(mats, axis=0)                     # (3, H_out, H_in)


# -----------------------------------------------------------------------------
# Stage forward (mirrors Stage.forward) -- single fused pallas_call
# -----------------------------------------------------------------------------
def stage_forward(x_nchw, graph, params):
    N, c_in, H, W = x_nchw.shape
    C = graph.n_channels
    Ho, Wo = H // 2, W // 2

    # NCHW -> NHWC -> merged lane-dense (N, H, W*C_in)
    x_m = jnp.transpose(x_nchw, (0, 2, 3, 1)).reshape(N, H, W * c_in)
    x_m = x_m.astype(jnp.float32)

    p1, p2, p3 = params[1], params[2], params[3]
    # TODO(synk): train-mode BatchNorm batch statistics not implemented;
    # eval-mode BN (running stats) is folded into the conv matrices below.
    m1, sh1 = _fold_sep_conv(p1['w_dw'], p1['w_pw'], p1['bn'], W, p1['stride'])
    m2, sh2 = _fold_sep_conv(p2['w_dw'], p2['w_pw'], p2['bn'], Wo, p2['stride'])
    m3, sh3 = _fold_sep_conv(p3['w_dw'], p3['w_pw'], p3['bn'], Wo, p3['stride'])
    r1 = _row_shift_mats(H, p1['stride'])              # (3, Ho, H)
    r23 = _row_shift_mats(Ho, 1)                       # (3, Ho, Ho), shared by nodes 2,3

    # Weighted-Aggregator coefficients: node2 (1 input) and node3 (2 inputs).
    coef = jnp.concatenate([jax.nn.sigmoid(p2['agg_w']),
                            jax.nn.sigmoid(p3['agg_w'])]).astype(jnp.float32)

    out_m = pl.pallas_call(
        _stage_kernel,
        out_shape=jax.ShapeDtypeStruct((N, Ho, Wo * C), jnp.float32),
        grid=(N,),
        in_specs=[
            pl.BlockSpec(memory_space=pltpu.MemorySpace.SMEM),         # coef
            pl.BlockSpec((None, H, W * c_in), lambda b: (b, 0, 0)),    # x (merged)
            pl.BlockSpec((3, Ho, H), lambda b: (0, 0, 0)),             # r1
            pl.BlockSpec((3, W * c_in, Wo * C), lambda b: (0, 0, 0)),  # m1
            pl.BlockSpec((1, Wo * C), lambda b: (0, 0)),               # sh1
            pl.BlockSpec((3, Ho, Ho), lambda b: (0, 0, 0)),            # r23
            pl.BlockSpec((3, Wo * C, Wo * C), lambda b: (0, 0, 0)),    # m2
            pl.BlockSpec((1, Wo * C), lambda b: (0, 0)),               # sh2
            pl.BlockSpec((3, Wo * C, Wo * C), lambda b: (0, 0, 0)),    # m3
            pl.BlockSpec((1, Wo * C), lambda b: (0, 0)),               # sh3
        ],
        out_specs=pl.BlockSpec((None, Ho, Wo * C), lambda b: (b, 0, 0)),
        compiler_params=pltpu.CompilerParams(
            dimension_semantics=("parallel",)),   # v7x: 2 TCs split the batch
    )(coef, x_m, r1, m1, sh1, r23, m2, sh2, m3, sh3)

    # merged (N, Ho, Wo*C) -> NHWC -> NCHW
    out = out_m.reshape(N, Ho, Wo, C)
    return jnp.transpose(out, (0, 3, 1, 2))


# -----------------------------------------------------------------------------
# Synthetic stage graph + deterministic parameters
# -----------------------------------------------------------------------------
class Node:
    def __init__(self, node_id, in_nodes=(), is_master_input=False,
                 is_master_output=False, is_sub_input=False):
        self.id = node_id
        self.in_nodes = list(in_nodes)
        self.is_master_input = is_master_input
        self.is_master_output = is_master_output
        self.is_sub_input = is_sub_input


class StageGraph:
    def __init__(self, nodes, unit, n_channels):
        self.nodes = nodes
        self.unit = unit
        self.n_channels = n_channels


def build_stage(key, in_planes, n_channels):
    n0 = Node(0, is_master_input=True)
    n1 = Node(1, in_nodes=[n0], is_sub_input=True)
    n2 = Node(2, in_nodes=[n1])
    n3 = Node(3, in_nodes=[n1, n2])
    n4 = Node(4, in_nodes=[n2, n3], is_master_output=True)
    graph = StageGraph([n0, n1, n2, n3, n4], unit='triple_unit',
                       n_channels=n_channels)

    params = {}
    for node in graph.nodes:
        if node.is_master_input or node.is_master_output:
            params[node.id] = None
            continue
        c_in = in_planes if node.is_sub_input else n_channels
        c_out = n_channels
        key, k1, k2, k3, k4, k5, k6, k7 = jax.random.split(key, 8)
        # Depthwise weight corresponds to PyTorch (C_in, 1, 3, 3) -> (3, 3, C_in);
        # pointwise weight to PyTorch (C_out, C_in, 1, 1) -> (C_in, C_out).
        w_dw = 0.2 * jax.random.normal(k1, (3, 3, c_in), jnp.float32)
        w_pw = jax.random.normal(k2, (c_in, c_out), jnp.float32) / jnp.sqrt(
            jnp.float32(c_in))
        gamma = 1.0 + 0.1 * jax.random.normal(k3, (c_out,), jnp.float32)
        beta = 0.1 * jax.random.normal(k4, (c_out,), jnp.float32)
        mean = 0.1 * jax.random.normal(k5, (c_out,), jnp.float32)
        var = 1.0 + 0.1 * jnp.abs(jax.random.normal(k6, (c_out,), jnp.float32))
        agg_w = None if node.is_sub_input else 0.1 * jax.random.normal(
            k7, (len(node.in_nodes),), jnp.float32)
        params[node.id] = dict(agg_w=agg_w, w_dw=w_dw, w_pw=w_pw,
                               bn=(gamma, beta, mean, var, 1e-5),
                               stride=2 if node.is_sub_input else 1)
    return graph, params


# -----------------------------------------------------------------------------
# Pure-JAX reference (for correctness check)
# -----------------------------------------------------------------------------
def _triple_unit_ref(xs, agg_w, w_dw, w_pw, bn, stride):
    if agg_w is None:
        h = xs[0]
    else:
        coef = jax.nn.sigmoid(agg_w)
        h = sum(c * x for c, x in zip(coef, xs))
    h = jax.nn.relu(h)
    c_in = h.shape[-1]
    dw_w = w_dw[:, :, None, :]                         # HWIO, I=1, O=c_in
    h = lax.conv_general_dilated(h, dw_w, window_strides=(stride, stride),
                                 padding=((1, 1), (1, 1)),
                                 dimension_numbers=('NHWC', 'HWIO', 'NHWC'),
                                 feature_group_count=c_in,
                                 precision=lax.Precision.HIGHEST)
    h = jnp.einsum('nhwc,co->nhwo', h, w_pw, precision=lax.Precision.HIGHEST)
    gamma, beta, mean, var, eps = bn
    return (h - mean) * (gamma / jnp.sqrt(var + eps)) + beta


def stage_forward_ref(x_nchw, graph, params):
    x = jnp.transpose(x_nchw, (0, 2, 3, 1)).astype(jnp.float32)
    node_outs = []
    for node in graph.nodes:
        if node.is_master_input:
            out = x
        else:
            gathered = [node_outs[nd.id] for nd in node.in_nodes]
            if node.is_master_output:
                out = sum(gathered) / len(gathered)
            else:
                p = params[node.id]
                out = _triple_unit_ref(gathered, p['agg_w'], p['w_dw'],
                                       p['w_pw'], p['bn'], p['stride'])
        node_outs.append(out)
    return jnp.transpose(node_outs[-1], (0, 3, 1, 2))


# -----------------------------------------------------------------------------
if __name__ == "__main__":
    key = jax.random.PRNGKey(0)
    kx, kp = jax.random.split(key)

    N, in_planes, H, W = 2, 8, 16, 16
    n_channels = 16

    x = jax.random.normal(kx, (N, in_planes, H, W), jnp.float32)   # NCHW input
    graph, params = build_stage(kp, in_planes, n_channels)

    fwd = jax.jit(lambda xx: stage_forward(xx, graph, params))
    out = jax.block_until_ready(fwd(x))
    assert out.shape == (N, n_channels, H // 2, W // 2), out.shape

    ref = jax.block_until_ready(stage_forward_ref(x, graph, params))
    max_err = float(jnp.max(jnp.abs(out - ref)))
    assert jnp.allclose(out, ref, atol=3e-2, rtol=3e-2), max_err

    print("KERNEL_OK")
</pallas_src>

<mosaic_0001>
module attributes {stable_mosaic.version = 11 : i64} {
  func.func @_stage_kernel(%arg0: i32, %arg1: memref<3xf32, #tpu.memory_space<smem>>, %arg2: memref<1x16x128xf32, #tpu.memory_space<vmem>>, %arg3: memref<3x8x16xf32, #tpu.memory_space<vmem>>, %arg4: memref<3x128x128xf32, #tpu.memory_space<vmem>>, %arg5: memref<1x128xf32, #tpu.memory_space<vmem>>, %arg6: memref<3x8x8xf32, #tpu.memory_space<vmem>>, %arg7: memref<3x128x128xf32, #tpu.memory_space<vmem>>, %arg8: memref<1x128xf32, #tpu.memory_space<vmem>>, %arg9: memref<3x128x128xf32, #tpu.memory_space<vmem>>, %arg10: memref<1x128xf32, #tpu.memory_space<vmem>>, %arg11: memref<1x8x128xf32, #tpu.memory_space<vmem>>) attributes {dimension_semantics = [#tpu.dimension_semantics<parallel>], iteration_bounds = array<i64: 2>, scalar_prefetch = 0 : i64, scratch_operands = 0 : i64, tpu.core_type = #tpu.core_type<tc>, window_params = [{transform_indices = @transform_0, window_bounds = array<i64: 3>}, {transform_indices = @transform_1, window_bounds = array<i64: 1, 16, 128>}, {pipeline_mode = #tpu.pipeline_mode<synchronous>, transform_indices = @transform_2, window_bounds = array<i64: 3, 8, 16>}, {pipeline_mode = #tpu.pipeline_mode<synchronous>, transform_indices = @transform_3, window_bounds = array<i64: 3, 128, 128>}, {pipeline_mode = #tpu.pipeline_mode<synchronous>, transform_indices = @transform_4, window_bounds = array<i64: 1, 128>}, {pipeline_mode = #tpu.pipeline_mode<synchronous>, transform_indices = @transform_5, window_bounds = array<i64: 3, 8, 8>}, {pipeline_mode = #tpu.pipeline_mode<synchronous>, transform_indices = @transform_6, window_bounds = array<i64: 3, 128, 128>}, {pipeline_mode = #tpu.pipeline_mode<synchronous>, transform_indices = @transform_7, window_bounds = array<i64: 1, 128>}, {pipeline_mode = #tpu.pipeline_mode<synchronous>, transform_indices = @transform_8, window_bounds = array<i64: 3, 128, 128>}, {pipeline_mode = #tpu.pipeline_mode<synchronous>, transform_indices = @transform_9, window_bounds = array<i64: 1, 128>}, {transform_indices = @transform_10, window_bounds = array<i64: 1, 8, 128>}]} {
    %c0 = arith.constant 0 : index
    %c0_0 = arith.constant 0 : index
    %c0_1 = arith.constant 0 : index
    %0 = vector.load %arg2[%c0, %c0_0, %c0_1] : memref<1x16x128xf32, #tpu.memory_space<vmem>>, vector<1x16x128xf32>
    %1 = vector.shape_cast %0 : vector<1x16x128xf32> to vector<16x128xf32>
    %cst = arith.constant 0.000000e+00 : f32
    %2 = vector.broadcast %cst : f32 to vector<16x128xf32>
    %3 = arith.maximumf %1, %2 : vector<16x128xf32>
    %c0_2 = arith.constant 0 : index
    %c0_3 = arith.constant 0 : index
    %4 = vector.load %arg5[%c0_2, %c0_3] : memref<1x128xf32, #tpu.memory_space<vmem>>, vector<1x128xf32>
    %c0_4 = arith.constant 0 : index
    %c0_5 = arith.constant 0 : index
    %c0_6 = arith.constant 0 : index
    %5 = vector.load %arg3[%c0_4, %c0_5, %c0_6] : memref<3x8x16xf32, #tpu.memory_space<vmem>>, vector<1x8x16xf32>
    %6 = vector.shape_cast %5 : vector<1x8x16xf32> to vector<8x16xf32>
    %cst_7 = arith.constant dense<0.000000e+00> : vector<8x128xf32>
    %7 = tpu.matmul %6, %3, %cst_7 {dimension_numbers = #tpu.dot_dimension_numbers<[1], [0], [0], [1], [0, 0, 1, 1], [], []>} : vector<8x16xf32>, vector<16x128xf32>, vector<8x128xf32> -> vector<8x128xf32>
    %c0_8 = arith.constant 0 : index
    %c0_9 = arith.constant 0 : index
    %c0_10 = arith.constant 0 : index
    %8 = vector.load %arg4[%c0_8, %c0_9, %c0_10] : memref<3x128x128xf32, #tpu.memory_space<vmem>>, vector<1x128x128xf32>
    %9 = vector.shape_cast %8 : vector<1x128x128xf32> to vector<128x128xf32>
    %cst_11 = arith.constant dense<0.000000e+00> : vector<8x128xf32>
    %10 = tpu.matmul %7, %9, %cst_11 {dimension_numbers = #tpu.dot_dimension_numbers<[1], [0], [0], [1], [0, 0, 1, 1], [], []>} : vector<8x128xf32>, vector<128x128xf32>, vector<8x128xf32> -> vector<8x128xf32>
    %11 = vector.broadcast %4 : vector<1x128xf32> to vector<8x128xf32>
    %12 = arith.addf %11, %10 : vector<8x128xf32>
    %c1 = arith.constant 1 : index
    %c0_12 = arith.constant 0 : index
    %c0_13 = arith.constant 0 : index
    %13 = vector.load %arg3[%c1, %c0_12, %c0_13] : memref<3x8x16xf32, #tpu.memory_space<vmem>>, vector<1x8x16xf32>
    %14 = vector.shape_cast %13 : vector<1x8x16xf32> to vector<8x16xf32>
    %cst_14 = arith.constant dense<0.000000e+00> : vector<8x128xf32>
    %15 = tpu.matmul %14, %3, %cst_14 {dimension_numbers = #tpu.dot_dimension_numbers<[1], [0], [0], [1], [0, 0, 1, 1], [], []>} : vector<8x16xf32>, vector<16x128xf32>, vector<8x128xf32> -> vector<8x128xf32>
    %c1_15 = arith.constant 1 : index
    %c0_16 = arith.constant 0 : index
    %c0_17 = arith.constant 0 : index
    %16 = vector.load %arg4[%c1_15, %c0_16, %c0_17] : memref<3x128x128xf32, #tpu.memory_space<vmem>>, vector<1x128x128xf32>
    %17 = vector.shape_cast %16 : vector<1x128x128xf32> to vector<128x128xf32>
    %cst_18 = arith.constant dense<0.000000e+00> : vector<8x128xf32>
    %18 = tpu.matmul %15, %17, %cst_18 {dimension_numbers = #tpu.dot_dimension_numbers<[1], [0], [0], [1], [0, 0, 1, 1], [], []>} : vector<8x128xf32>, vector<128x128xf32>, vector<8x128xf32> -> vector<8x128xf32>
    %19 = arith.addf %12, %18 : vector<8x128xf32>
    %c2 = arith.constant 2 : index
    %c0_19 = arith.constant 0 : index
    %c0_20 = arith.constant 0 : index
    %20 = vector.load %arg3[%c2, %c0_19, %c0_20] : memref<3x8x16xf32, #tpu.memory_space<vmem>>, vector<1x8x16xf32>
    %21 = vector.shape_cast %20 : vector<1x8x16xf32> to vector<8x16xf32>
    %cst_21 = arith.constant dense<0.000000e+00> : vector<8x128xf32>
    %22 = tpu.matmul %21, %3, %cst_21 {dimension_numbers = #tpu.dot_dimension_numbers<[1], [0], [0], [1], [0, 0, 1, 1], [], []>} : vector<8x16xf32>, vector<16x128xf32>, vector<8x128xf32> -> vector<8x128xf32>
    %c2_22 = arith.constant 2 : index
    %c0_23 = arith.constant 0 : index
    %c0_24 = arith.constant 0 : index
    %23 = vector.load %arg4[%c2_22, %c0_23, %c0_24] : memref<3x128x128xf32, #tpu.memory_space<vmem>>, vector<1x128x128xf32>
    %24 = vector.shape_cast %23 : vector<1x128x128xf32> to vector<128x128xf32>
    %cst_25 = arith.constant dense<0.000000e+00> : vector<8x128xf32>
    %25 = tpu.matmul %22, %24, %cst_25 {dimension_numbers = #tpu.dot_dimension_numbers<[1], [0], [0], [1], [0, 0, 1, 1], [], []>} : vector<8x128xf32>, vector<128x128xf32>, vector<8x128xf32> -> vector<8x128xf32>
    %26 = arith.addf %19, %25 : vector<8x128xf32>
    %c0_26 = arith.constant 0 : index
    %27 = memref.load %arg1[%c0_26] : memref<3xf32, #tpu.memory_space<smem>>
    %28 = vector.broadcast %27 : f32 to vector<8x128xf32>
    %29 = arith.mulf %28, %26 : vector<8x128xf32>
    %cst_27 = arith.constant 0.000000e+00 : f32
    %30 = vector.broadcast %cst_27 : f32 to vector<8x128xf32>
    %31 = arith.maximumf %29, %30 : vector<8x128xf32>
    %c0_28 = arith.constant 0 : index
    %c0_29 = arith.constant 0 : index
    %32 = vector.load %arg8[%c0_28, %c0_29] : memref<1x128xf32, #tpu.memory_space<vmem>>, vector<1x128xf32>
    %c0_30 = arith.constant 0 : index
    %c0_31 = arith.constant 0 : index
    %c0_32 = arith.constant 0 : index
    %33 = vector.load %arg6[%c0_30, %c0_31, %c0_32] : memref<3x8x8xf32, #tpu.memory_space<vmem>>, vector<1x8x8xf32>
    %34 = vector.shape_cast %33 : vector<1x8x8xf32> to vector<8x8xf32>
    %cst_33 = arith.constant dense<0.000000e+00> : vector<8x128xf32>
    %35 = tpu.matmul %34, %31, %cst_33 {dimension_numbers = #tpu.dot_dimension_numbers<[1], [0], [0], [1], [0, 0, 1, 1], [], []>} : vector<8x8xf32>, vector<8x128xf32>, vector<8x128xf32> -> vector<8x128xf32>
    %c0_34 = arith.constant 0 : index
    %c0_35 = arith.constant 0 : index
    %c0_36 = arith.constant 0 : index
    %36 = vector.load %arg7[%c0_34, %c0_35, %c0_36] : memref<3x128x128xf32, #tpu.memory_space<vmem>>, vector<1x128x128xf32>
    %37 = vector.shape_cast %36 : vector<1x128x128xf32> to vector<128x128xf32>
    %cst_37 = arith.constant dense<0.000000e+00> : vector<8x128xf32>
    %38 = tpu.matmul %35, %37, %cst_37 {dimension_numbers = #tpu.dot_dimension_numbers<[1], [0], [0], [1], [0, 0, 1, 1], [], []>} : vector<8x128xf32>, vector<128x128xf32>, vector<8x128xf32> -> vector<8x128xf32>
    %39 = vector.broadcast %32 : vector<1x128xf32> to vector<8x128xf32>
    %40 = arith.addf %39, %38 : vector<8x128xf32>
    %c1_38 = arith.constant 1 : index
    %c0_39 = arith.constant 0 : index
    %c0_40 = arith.constant 0 : index
    %41 = vector.load %arg6[%c1_38, %c0_39, %c0_40] : memref<3x8x8xf32, #tpu.memory_space<vmem>>, vector<1x8x8xf32>
    %42 = vector.shape_cast %41 : vector<1x8x8xf32> to vector<8x8xf32>
    %cst_41 = arith.constant dense<0.000000e+00> : vector<8x128xf32>
    %43 = tpu.matmul %42, %31, %cst_41 {dimension_numbers = #tpu.dot_dimension_numbers<[1], [0], [0], [1], [0, 0, 1, 1], [], []>} : vector<8x8xf32>, vector<8x128xf32>, vector<8x128xf32> -> vector<8x128xf32>
    %c1_42 = arith.constant 1 : index
    %c0_43 = arith.constant 0 : index
    %c0_44 = arith.constant 0 : index
    %44 = vector.load %arg7[%c1_42, %c0_43, %c0_44] : memref<3x128x128xf32, #tpu.memory_space<vmem>>, vector<1x128x128xf32>
    %45 = vector.shape_cast %44 : vector<1x128x128xf32> to vector<128x128xf32>
    %cst_45 = arith.constant dense<0.000000e+00> : vector<8x128xf32>
    %46 = tpu.matmul %43, %45, %cst_45 {dimension_numbers = #tpu.dot_dimension_numbers<[1], [0], [0], [1], [0, 0, 1, 1], [], []>} : vector<8x128xf32>, vector<128x128xf32>, vector<8x128xf32> -> vector<8x128xf32>
    %47 = arith.addf %40, %46 : vector<8x128xf32>
    %c2_46 = arith.constant 2 : index
    %c0_47 = arith.constant 0 : index
    %c0_48 = arith.constant 0 : index
    %48 = vector.load %arg6[%c2_46, %c0_47, %c0_48] : memref<3x8x8xf32, #tpu.memory_space<vmem>>, vector<1x8x8xf32>
    %49 = vector.shape_cast %48 : vector<1x8x8xf32> to vector<8x8xf32>
    %cst_49 = arith.constant dense<0.000000e+00> : vector<8x128xf32>
    %50 = tpu.matmul %49, %31, %cst_49 {dimension_numbers = #tpu.dot_dimension_numbers<[1], [0], [0], [1], [0, 0, 1, 1], [], []>} : vector<8x8xf32>, vector<8x128xf32>, vector<8x128xf32> -> vector<8x128xf32>
    %c2_50 = arith.constant 2 : index
    %c0_51 = arith.constant 0 : index
    %c0_52 = arith.constant 0 : index
    %51 = vector.load %arg7[%c2_50, %c0_51, %c0_52] : memref<3x128x128xf32, #tpu.memory_space<vmem>>, vector<1x128x128xf32>
    %52 = vector.shape_cast %51 : vector<1x128x128xf32> to vector<128x128xf32>
    %cst_53 = arith.constant dense<0.000000e+00> : vector<8x128xf32>
    %53 = tpu.matmul %50, %52, %cst_53 {dimension_numbers = #tpu.dot_dimension_numbers<[1], [0], [0], [1], [0, 0, 1, 1], [], []>} : vector<8x128xf32>, vector<128x128xf32>, vector<8x128xf32> -> vector<8x128xf32>
    %54 = arith.addf %47, %53 : vector<8x128xf32>
    %c1_54 = arith.constant 1 : index
    %55 = memref.load %arg1[%c1_54] : memref<3xf32, #tpu.memory_space<smem>>
    %56 = vector.broadcast %55 : f32 to vector<8x128xf32>
    %57 = arith.mulf %56, %26 : vector<8x128xf32>
    %c2_55 = arith.constant 2 : index
    %58 = memref.load %arg1[%c2_55] : memref<3xf32, #tpu.memory_space<smem>>
    %59 = vector.broadcast %58 : f32 to vector<8x128xf32>
    %60 = arith.mulf %59, %54 : vector<8x128xf32>
    %61 = arith.addf %57, %60 : vector<8x128xf32>
    %cst_56 = arith.constant 0.000000e+00 : f32
    %62 = vector.broadcast %cst_56 : f32 to vector<8x128xf32>
    %63 = arith.maximumf %61, %62 : vector<8x128xf32>
    %c0_57 = arith.constant 0 : index
    %c0_58 = arith.constant 0 : index
    %64 = vector.load %arg10[%c0_57, %c0_58] : memref<1x128xf32, #tpu.memory_space<vmem>>, vector<1x128xf32>
    %c0_59 = arith.constant 0 : index
    %c0_60 = arith.constant 0 : index
    %c0_61 = arith.constant 0 : index
    %65 = vector.load %arg6[%c0_59, %c0_60, %c0_61] : memref<3x8x8xf32, #tpu.memory_space<vmem>>, vector<1x8x8xf32>
    %66 = vector.shape_cast %65 : vector<1x8x8xf32> to vector<8x8xf32>
    %cst_62 = arith.constant dense<0.000000e+00> : vector<8x128xf32>
    %67 = tpu.matmul %66, %63, %cst_62 {dimension_numbers = #tpu.dot_dimension_numbers<[1], [0], [0], [1], [0, 0, 1, 1], [], []>} : vector<8x8xf32>, vector<8x128xf32>, vector<8x128xf32> -> vector<8x128xf32>
    %c0_63 = arith.constant 0 : index
    %c0_64 = arith.constant 0 : index
    %c0_65 = arith.constant 0 : index
    %68 = vector.load %arg9[%c0_63, %c0_64, %c0_65] : memref<3x128x128xf32, #tpu.memory_space<vmem>>, vector<1x128x128xf32>
    %69 = vector.shape_cast %68 : vector<1x128x128xf32> to vector<128x128xf32>
    %cst_66 = arith.constant dense<0.000000e+00> : vector<8x128xf32>
    %70 = tpu.matmul %67, %69, %cst_66 {dimension_numbers = #tpu.dot_dimension_numbers<[1], [0], [0], [1], [0, 0, 1, 1], [], []>} : vector<8x128xf32>, vector<128x128xf32>, vector<8x128xf32> -> vector<8x128xf32>
    %71 = vector.broadcast %64 : vector<1x128xf32> to vector<8x128xf32>
    %72 = arith.addf %71, %70 : vector<8x128xf32>
    %c1_67 = arith.constant 1 : index
    %c0_68 = arith.constant 0 : index
    %c0_69 = arith.constant 0 : index
    %73 = vector.load %arg6[%c1_67, %c0_68, %c0_69] : memref<3x8x8xf32, #tpu.memory_space<vmem>>, vector<1x8x8xf32>
    %74 = vector.shape_cast %73 : vector<1x8x8xf32> to vector<8x8xf32>
    %cst_70 = arith.constant dense<0.000000e+00> : vector<8x128xf32>
    %75 = tpu.matmul %74, %63, %cst_70 {dimension_numbers = #tpu.dot_dimension_numbers<[1], [0], [0], [1], [0, 0, 1, 1], [], []>} : vector<8x8xf32>, vector<8x128xf32>, vector<8x128xf32> -> vector<8x128xf32>
    %c1_71 = arith.constant 1 : index
    %c0_72 = arith.constant 0 : index
    %c0_73 = arith.constant 0 : index
    %76 = vector.load %arg9[%c1_71, %c0_72, %c0_73] : memref<3x128x128xf32, #tpu.memory_space<vmem>>, vector<1x128x128xf32>
    %77 = vector.shape_cast %76 : vector<1x128x128xf32> to vector<128x128xf32>
    %cst_74 = arith.constant dense<0.000000e+00> : vector<8x128xf32>
    %78 = tpu.matmul %75, %77, %cst_74 {dimension_numbers = #tpu.dot_dimension_numbers<[1], [0], [0], [1], [0, 0, 1, 1], [], []>} : vector<8x128xf32>, vector<128x128xf32>, vector<8x128xf32> -> vector<8x128xf32>
    %79 = arith.addf %72, %78 : vector<8x128xf32>
    %c2_75 = arith.constant 2 : index
    %c0_76 = arith.constant 0 : index
    %c0_77 = arith.constant 0 : index
    %80 = vector.load %arg6[%c2_75, %c0_76, %c0_77] : memref<3x8x8xf32, #tpu.memory_space<vmem>>, vector<1x8x8xf32>
    %81 = vector.shape_cast %80 : vector<1x8x8xf32> to vector<8x8xf32>
    %cst_78 = arith.constant dense<0.000000e+00> : vector<8x128xf32>
    %82 = tpu.matmul %81, %63, %cst_78 {dimension_numbers = #tpu.dot_dimension_numbers<[1], [0], [0], [1], [0, 0, 1, 1], [], []>} : vector<8x8xf32>, vector<8x128xf32>, vector<8x128xf32> -> vector<8x128xf32>
    %c2_79 = arith.constant 2 : index
    %c0_80 = arith.constant 0 : index
    %c0_81 = arith.constant 0 : index
    %83 = vector.load %arg9[%c2_79, %c0_80, %c0_81] : memref<3x128x128xf32, #tpu.memory_space<vmem>>, vector<1x128x128xf32>
    %84 = vector.shape_cast %83 : vector<1x128x128xf32> to vector<128x128xf32>
    %cst_82 = arith.constant dense<0.000000e+00> : vector<8x128xf32>
    %85 = tpu.matmul %82, %84, %cst_82 {dimension_numbers = #tpu.dot_dimension_numbers<[1], [0], [0], [1], [0, 0, 1, 1], [], []>} : vector<8x128xf32>, vector<128x128xf32>, vector<8x128xf32> -> vector<8x128xf32>
    %86 = arith.addf %79, %85 : vector<8x128xf32>
    %87 = arith.addf %54, %86 : vector<8x128xf32>
    %cst_83 = arith.constant 5.000000e-01 : f32
    %88 = vector.broadcast %cst_83 : f32 to vector<8x128xf32>
    %89 = arith.mulf %88, %87 : vector<8x128xf32>
    %c0_84 = arith.constant 0 : index
    %c0_85 = arith.constant 0 : index
    %c0_86 = arith.constant 0 : index
    %90 = vector.load %arg11[%c0_84, %c0_85, %c0_86] : memref<1x8x128xf32, #tpu.memory_space<vmem>>, vector<1x8x128xf32>
    %91 = vector.shape_cast %90 : vector<1x8x128xf32> to vector<8x128xf32>
    %92 = vector.shape_cast %89 : vector<8x128xf32> to vector<1x8x128xf32>
    tpu.vector_store %arg11[%c0_84, %c0_85, %c0_86], %92 {strides = array<i32>} : memref<1x8x128xf32, #tpu.memory_space<vmem>>, vector<1x8x128xf32>,
    return
  }
  func.func @transform_0(%arg0: i32) -> i32 {
    %c0_i32 = arith.constant 0 : i32
    %c0_i32_0 = arith.constant 0 : i32
    return %c0_i32 : i32
  }
  func.func @transform_1(%arg0: i32) -> (i32, i32, i32) {
    %c0_i32 = arith.constant 0 : i32
    %c0_i32_0 = arith.constant 0 : i32
    %c0_i32_1 = arith.constant 0 : i32
    return %arg0, %c0_i32, %c0_i32_0 : i32, i32, i32
  }
  func.func @transform_2(%arg0: i32) -> (i32, i32, i32) {
    %c0_i32 = arith.constant 0 : i32
    %c0_i32_0 = arith.constant 0 : i32
    %c0_i32_1 = arith.constant 0 : i32
    %c0_i32_2 = arith.constant 0 : i32
    return %c0_i32, %c0_i32_0, %c0_i32_1 : i32, i32, i32
  }
  func.func @transform_3(%arg0: i32) -> (i32, i32, i32) {
    %c0_i32 = arith.constant 0 : i32
    %c0_i32_0 = arith.constant 0 : i32
    %c0_i32_1 = arith.constant 0 : i32
    %c0_i32_2 = arith.constant 0 : i32
    return %c0_i32, %c0_i32_0, %c0_i32_1 : i32, i32, i32
  }
  func.func @transform_4(%arg0: i32) -> (i32, i32) {
    %c0_i32 = arith.constant 0 : i32
    %c0_i32_0 = arith.constant 0 : i32
    %c0_i32_1 = arith.constant 0 : i32
    return %c0_i32, %c0_i32_0 : i32, i32
  }
  func.func @transform_5(%arg0: i32) -> (i32, i32, i32) {
    %c0_i32 = arith.constant 0 : i32
    %c0_i32_0 = arith.constant 0 : i32
    %c0_i32_1 = arith.constant 0 : i32
    %c0_i32_2 = arith.constant 0 : i32
    return %c0_i32, %c0_i32_0, %c0_i32_1 : i32, i32, i32
  }
  func.func @transform_6(%arg0: i32) -> (i32, i32, i32) {
    %c0_i32 = arith.constant 0 : i32
    %c0_i32_0 = arith.constant 0 : i32
    %c0_i32_1 = arith.constant 0 : i32
    %c0_i32_2 = arith.constant 0 : i32
    return %c0_i32, %c0_i32_0, %c0_i32_1 : i32, i32, i32
  }
  func.func @transform_7(%arg0: i32) -> (i32, i32) {
    %c0_i32 = arith.constant 0 : i32
    %c0_i32_0 = arith.constant 0 : i32
    %c0_i32_1 = arith.constant 0 : i32
    return %c0_i32, %c0_i32_0 : i32, i32
  }
  func.func @transform_8(%arg0: i32) -> (i32, i32, i32) {
    %c0_i32 = arith.constant 0 : i32
    %c0_i32_0 = arith.constant 0 : i32
    %c0_i32_1 = arith.constant 0 : i32
    %c0_i32_2 = arith.constant 0 : i32
    return %c0_i32, %c0_i32_0, %c0_i32_1 : i32, i32, i32
  }
  func.func @transform_9(%arg0: i32) -> (i32, i32) {
    %c0_i32 = arith.constant 0 : i32
    %c0_i32_0 = arith.constant 0 : i32
    %c0_i32_1 = arith.constant 0 : i32
    return %c0_i32, %c0_i32_0 : i32, i32
  }
  func.func @transform_10(%arg0: i32) -> (i32, i32, i32) {
    %c0_i32 = arith.constant 0 : i32
    %c0_i32_0 = arith.constant 0 : i32
    %c0_i32_1 = arith.constant 0 : i32
    return %arg0, %c0_i32, %c0_i32_0 : i32, i32, i32
  }
}

</mosaic_0001>

<bundles_post_ra>
// kernel: tile.14
= control target key start
LH: loop header
LB: loop body
LE: loop exit
PB: predicated region body
PF: predicated region fallthrough
CT: control target
= control target key end

     0   :  { %s22_s0 = inlined_call_operand.vmem [shape: f32[16], index: 0, kind: input, shape index: {}]   ;;  %s23_s1 = inlined_call_operand.vmem [shape: f32[8,16], index: 1, kind: output, shape index: {}]  }
   0x1   :  { %v4_v0 = vld [vmem:[%s22_s0] ss:$0 sm:$0xff] }
   0x2   :  { %5 = vst [vmem:[%s23_s1] sm:$0xff] %v4_v0 }

// kernel: tile.15
= control target key start
LH: loop header
LB: loop body
LE: loop exit
PB: predicated region body
PF: predicated region fallthrough
CT: control target
= control target key end

     0   :  { %s67_s10 = smov 112   ;;  %s68_s11 = smov 80   ;;  %vm3_vm0 = vcmask 130048   ;;  %vm9_vm1 = vcmask 1048448   ;;  %vm15_vm2 = vcmask 917248   ;;  %vm21_vm3 = vcmask 786048   ;;  %s111_s0 = inlined_call_operand.vmem [shape: f32[8,16], index: 0, kind: input, shape index: {}]   ;;  %s112_s1 = inlined_call_operand.vmem [shape: f32[1,128], index: 1, kind: output, shape index: {}]  }
   0x1   :  { %v53_v0 = vld [vmem:[%s111_s0 + $0x7] sm:$0x1]   ;;  %v55_v1 = vld [vmem:[%s111_s0 + $0x5] sm:$0x1]   ;;  %v54_v2 = vld [vmem:[%s111_s0 + $0x6] sm:$0x1]  }
   0x2   :  { %7 = vrot.lane.b32.xlu0 %v53_v0, %s67_s10  ;;  %19 = vrot.lane.b32.xlu1 %v55_v1, %s68_s11  ;;  %v56_v3 = vld [vmem:[%s111_s0 + $0x4] sm:$0x1]   ;;  %v2_v4 = vld [vmem:[%s111_s0] sm:$0x1]   ;;  %s69_s18 = smov 96   ;;  %s70_s19 = smov 64  }
   0x3   :  { %4 = vst.msk [vmem:[#allocation0] sm:$0x1] %vm3_vm0, %v2_v4   ;;  %v57_v5 = vld [vmem:[%s111_s0 + $0x3] sm:$0x1]   ;;  %v58_v6 = vld [vmem:[%s111_s0 + $0x2] sm:$0x1]  }
   0x4   :  { %s71_s24 = smov 48   ;;  %s72_s25 = smov 32   ;;  %v59_v7 = vld [vmem:[%s111_s0 + $0x1] sm:$0x1]   ;;  %vm27_vm4 = vcmask 654848   ;;  %vm33_vm5 = vcmask 523648  }
   0x5   :  { %s73_s0 = smov 16   ;;  %vm39_vm6 = vcmask 392448   ;;  %vm45_vm7 = vcmask 261248  }
   0x6   :  { %13 = vrot.lane.b32.xlu0 %v54_v2, %s69_s18  ;;  %25 = vrot.lane.b32.xlu1 %v56_v3, %s70_s19 }
   0xa   :  { %31 = vrot.lane.b32.xlu0 %v57_v5, %s71_s24  ;;  %37 = vrot.lane.b32.xlu1 %v58_v6, %s72_s25 }
   0xe   :  { %43 = vrot.lane.b32.xlu0 %v59_v7, %s73_s0 }
  0x74   :  { %v8_v8 = vpop.permute.xlu0 %7   ;;  %v20_v9 = vpop.permute.xlu1 %19  }
  0x75   :  { %10 = vst.msk [vmem:[#allocation0] sm:$0x1] %vm9_vm1, %v8_v8  }
  0x78   :  { %v14_v10 = vpop.permute.xlu0 %13   ;;  %v26_v11 = vpop.permute.xlu1 %25  }
  0x79   :  { %16 = vst.msk [vmem:[#allocation0] sm:$0x1] %vm15_vm2, %v14_v10  }
  0x7a   :  { %22 = vst.msk [vmem:[#allocation0] sm:$0x1] %vm21_vm3, %v20_v9  }
  0x7b   :  { %28 = vst.msk [vmem:[#allocation0] sm:$0x1] %vm27_vm4, %v26_v11  }
  0x7c   :  { %v32_v12 = vpop.permute.xlu0 %31   ;;  %v38_v13 = vpop.permute.xlu1 %37  }
  0x7d   :  { %34 = vst.msk [vmem:[#allocation0] sm:$0x1] %vm33_vm5, %v32_v12  }
  0x7e   :  { %40 = vst.msk [vmem:[#allocation0] sm:$0x1] %vm39_vm6, %v38_v13  }
  0x80   :  { %v44_v14 = vpop.permute.xlu0 %43  }
  0x81   :  { %46 = vst.msk [vmem:[#allocation0] sm:$0x1] %vm45_vm7, %v44_v14  }
  0x88   :  { %v50_v15 = vld [vmem:[#allocation0] sm:$0x1] }
  0x89   :  { %52 = vst [vmem:[%s112_s1] sm:$0x1] %v50_v15 }

// kernel: _lambda_.1
= control target key start
LH: loop header
LB: loop body
LE: loop exit
PB: predicated region body
PF: predicated region fallthrough
CT: control target
= control target key end

     0   :  { %15 = vsyncpa [#allocation3], 0  ;;  %s2936_s13 = smov 0   ;;  %s3592_s0 = inlined_call_operand.vmem [shape: f32[3], index: 0, kind: input, shape index: {}]   ;;  %s3593_s1 = inlined_call_operand.vmem [shape: f32[2,16,128], index: 1, kind: input, shape index: {}]   ;;  %s3594_s2 = inlined_call_operand.vmem [shape: f32[3,8,16], index: 2, kind: input, shape index: {}]   ;;  %s3595_s3 = inlined_call_operand.vmem [shape: f32[3,128,128], index: 3, kind: input, shape index: {}]   ;;  %s3596_s4 = inlined_call_operand.vmem [shape: f32[1,128], index: 4, kind: input, shape index: {}]   ;;  %s3597_s5 = inlined_call_operand.vmem [shape: f32[3,8,8], index: 5, kind: input, shape index: {}]   ;;  %s3598_s6 = inlined_call_operand.vmem [shape: f32[3,128,128], index: 6, kind: input, shape index: {}]   ;;  %s3599_s7 = inlined_call_operand.vmem [shape: f32[1,128], index: 7, kind: input, shape index: {}]   ;;  %s3600_s8 = inlined_call_operand.vmem [shape: f32[3,128,128], index: 8, kind: input, shape index: {}]   ;;  %s3601_s9 = inlined_call_operand.vmem [shape: f32[1,128], index: 9, kind: input, shape index: {}]   ;;  %s3602_s10 = inlined_call_operand.vmem [shape: f32[2,8,128], index: 10, kind: output, shape index: {}]  }
   0x1 LB: > { %s2942_s14 = sadd.s32 4294967295, %s2875_s13   ;;  %p1928_p0 = scmp.ge.s32.totalorder %s2875_s13, 1  ;;  %s2875_s13 = sphi %s2936_s13, %s21_s13  }
   0x2   : > { %p267_p1 = scmp.lt.s32.totalorder %s2875_s13, 3  ;;  %s280_s17 = sshll.u32 %s3592_s0, 4  ;;  %s281_s17 = int_to_ptr.vmem [resolvable:$true] %s280_s17 }
   0x3   : > { %p2836_p3 = scmp.eq.s32.totalorder %s2942_s14, 0  ;;  %s2850_s19 = scalar_lea.vmem %s281_s17, 16 }
   0x4   : > { %p2949_p2 = pnand %p1928_p0, %p267_p1  ;;  %p2851_p6 = scmp.ne.s32.totalorder %s281_s17, %s2850_s19 }
   0x5   : > { %p2858_p10 = scmp.lt.s32.totalorder %s281_s17, %s281_s17  ;;  %p2859_p11 = scmp.lt.s32.totalorder %s2850_s19, %s2850_s19 }
   0x6   : > { %p2832_p4 = pneg %p2949_p2 }
   0x7   : > { %p2860_p12 = por %p2859_p11, %p2858_p10 }
   0x8   : > { %p2833_p5 = pnand %p2836_p3, %p2832_p4 }
   0xa   : > { %p2852_p7 = pneg %p2833_p5 }
   0xc   : > { %p2853_p8 = pnand %p2852_p7, %p2851_p6 }
   0xe   : > { %p2854_p9 = pneg %p2853_p8 }
  0x10   : > { %p2861_p13 = pnand %p2860_p12, %p2854_p9 }
  0x12   : > { %2864 = shalt.err (!%p2861_p13)
}
  0x13   : > { %s2877_s20 = smov [#allocation2]   ;;  %325 = sbr.rel (%p2949_p2) target bundleno = 2049 (0x801), region = 60 }
  0x14   : > { %2835 = dma.vmem_to_smem (!%p2833_p5), %s281_s17, 16, %s2877_s20, [#allocation3]  }
  0x1a   : > { %2870 = dma.done.wait (%p2836_p3), [#allocation3], 16  }
  0x1b   : > { %2872 = vsyncadd (%p2836_p3), [#allocation3], 4294967280 }
  0x1c   : > { %331 = sfence }
  0x1d   : > { %p363_p0 = scmp.lt.s32.totalorder %s2942_s14, 1  ;;  %v2878_v0 = vmov 0.0|0.0   ;;  %vm2879_vm0 = vmmov 0   ;;  %v2880_v1 = vmov 0.0   ;;  %v452_v2 = vld [vmem:[%s3595_s3] sm:$0xff]  ;;  %v453_v3 = vld [vmem:[%s3595_s3 + $0x8] sm:$0xff] }
  0x1e   : > { %2593 = vmatprep.subr.bf16.mxu0 %v2878_v0  ;;  %2231 = vmatprep.mubr.msk.f32.mxu0 %vm2879_vm0, %v2880_v1  ;;  %v454_v4 = vld [vmem:[%s3595_s3 + $0x10] sm:$0xff]  ;;  %v455_v5 = vld [vmem:[%s3595_s3 + $0x18] sm:$0xff]  ;;  %v2597_v6 = vpack.c.bf16 %v453_v3, %v452_v2  ;;  %v456_v8 = vld [vmem:[%s3595_s3 + $0x20] sm:$0xff]  ;;  %vm378_vm1 = vcmask 130048   ;;  %s871_s19 = sld [smem:[#allocation2]]  ;;  %vm877_vm2 = vcmask 64512  }
  0x1f   : > { %s3605_s14 = smov (!%p363_p0, %s2942_s14), 1  ;;  %2596 = vmatprep.subr.bf16.mxu1 %v2878_v0  ;;  %2266 = vmatprep.mubr.msk.f32.mxu1 %vm2879_vm0, %v2880_v1  ;;  %v2600_v7 = vpack.c.bf16 %v455_v5, %v454_v4  ;;  %v457_v11 = vld [vmem:[%s3595_s3 + $0x28] sm:$0xff]  ;;  %v458_v16 = vld [vmem:[%s3595_s3 + $0x30] sm:$0xff]  ;;  %v459_v17 = vld [vmem:[%s3595_s3 + $0x38] sm:$0xff]  ;;  %s2012_s30 = sld [smem:[#allocation2 + $0x1]] }
  0x20   : > { %s2052_s29 = sshll.u32 %s3605_s14, 4  ;;  %2598 = vmatpush3.bf16.msra.mxu1 %v2597_v6  ;;  %v2603_v15 = vpack.c.bf16 %v457_v11, %v456_v8  ;;  %v377_v18 = vld [vmem:[%s3594_s2] sm:$0xff]  ;;  %v2606_v19 = vpack.c.bf16 %v459_v17, %v458_v16  ;;  %v461_v21 = vld [vmem:[%s3595_s3 + $0x48] sm:$0xff]  ;;  %v462_v24 = vld [vmem:[%s3595_s3 + $0x50] sm:$0xff]  ;;  %s2013_s11 = sld [smem:[#allocation2 + $0x2]] }
  0x21   : > { %s367_s12 = scalar_lea.vmem %s3593_s1, %s2052_s29  ;;  %2599 = vmatprep.subr.bf16.mxu1 %v2878_v0  ;;  %v460_v20 = vld [vmem:[%s3595_s3 + $0x40] sm:$0xff]  ;;  %v1938_v22 = vld [vmem:[%s3594_s2 + $0x8] sm:$0xff]  ;;  %v463_v25 = vld [vmem:[%s3595_s3 + $0x58] sm:$0xff]  ;;  %s1935_s28 = sshll.u32 %s3605_s14, 3 }
  0x22   : > { %v372_v9 = vld [vmem:[%s367_s12] sm:$0xff]  ;;  %v373_v10 = vld [vmem:[%s367_s12 + $0x8] sm:$0xff]  ;;  %v2609_v23 = vpack.c.bf16 %v461_v21, %v460_v20  ;;  %v1956_v26 = vld [vmem:[%s3594_s2 + $0x10] sm:$0xff]  ;;  %v2612_v27 = vpack.c.bf16 %v463_v25, %v462_v24 }
  0x23   : > { %v374_v12 = vmax.f32 %v372_v9, 0.0  ;;  %v375_v13 = vmax.f32 %v373_v10, 0.0  ;;  %v464_v28 = vld [vmem:[%s3595_s3 + $0x60] sm:$0xff]  ;;  %v465_v29 = vld [vmem:[%s3595_s3 + $0x68] sm:$0xff]  ;;  %v466_v31 = vld [vmem:[%s3595_s3 + $0x70] sm:$0xff] }
  0x24   : > { %2601 = vmatpush3.bf16.msra.mxu1 %v2600_v7  ;;  %v2615_v30 = vpack.c.bf16 %v465_v29, %v464_v28  ;;  %v467_v32 = vld [vmem:[%s3595_s3 + $0x78] sm:$0xff]  ;;  %v1940_v34 = vld [vmem:[%s3595_s3 + $0x80] sm:$0xff]  ;;  %v1941_v35 = vld [vmem:[%s3595_s3 + $0x88] sm:$0xff]  ;;  %v872_v28 = vstv %s871_s19 }
  0x25   : > { %v2594_v14 = vpack.c.bf16 %v375_v13, %v374_v12  ;;  %2602 = vmatprep.subr.bf16.mxu1 %v2878_v0  ;;  %v2618_v33 = vpack.c.bf16 %v467_v32, %v466_v31  ;;  %v2624_v36 = vpack.c.bf16 %v1941_v35, %v1940_v34  ;;  %v1942_v37 = vld [vmem:[%s3595_s3 + $0x90] sm:$0xff]  ;;  %v1943_v38 = vld [vmem:[%s3595_s3 + $0x98] sm:$0xff]  ;;  %v1944_v42 = vld [vmem:[%s3595_s3 + $0xa0] sm:$0xff] }
  0x26   : > { %v2627_v41 = vpack.c.bf16 %v1943_v38, %v1942_v37  ;;  %v1945_v43 = vld [vmem:[%s3595_s3 + $0xa8] sm:$0xff]  ;;  %v1946_v47 = vld [vmem:[%s3595_s3 + $0xb0] sm:$0xff]  ;;  %v1947_v48 = vld [vmem:[%s3595_s3 + $0xb8] sm:$0xff] }
  0x27   : > { %2595 = vmatpush3.bf16.msra.mxu0 %v2594_v14  ;;  %v2630_v46 = vpack.c.bf16 %v1945_v43, %v1944_v42  ;;  %v2633_v51 = vpack.c.bf16 %v1947_v48, %v1946_v47  ;;  %v1948_v52 = vld [vmem:[%s3595_s3 + $0xc0] sm:$0xff]  ;;  %v1949_v53 = vld [vmem:[%s3595_s3 + $0xc8] sm:$0xff]  ;;  %v1950_v55 = vld [vmem:[%s3595_s3 + $0xd0] sm:$0xff] }
  0x28   : > { %2620 = vmatprep.subr.bf16.mxu0 %v2878_v0  ;;  %2604 = vmatpush3.bf16.msra.mxu1 %v2603_v15  ;;  %v2636_v54 = vpack.c.bf16 %v1949_v53, %v1948_v52  ;;  %v1951_v56 = vld [vmem:[%s3595_s3 + $0xd8] sm:$0xff]  ;;  %v1952_v58 = vld [vmem:[%s3595_s3 + $0xe0] sm:$0xff]  ;;  %v1953_v59 = vld [vmem:[%s3595_s3 + $0xe8] sm:$0xff] }
  0x29   : > { %2605 = vmatprep.subr.bf16.mxu1 %v2878_v0  ;;  %v2639_v57 = vpack.c.bf16 %v1951_v56, %v1950_v55  ;;  %v2642_v60 = vpack.c.bf16 %v1953_v59, %v1952_v58  ;;  %v1954_v61 = vld [vmem:[%s3595_s3 + $0xf0] sm:$0xff]  ;;  %v1955_v62 = vld [vmem:[%s3595_s3 + $0xf8] sm:$0xff]  ;;  %v1958_v2 = vld [vmem:[%s3595_s3 + $0x100] sm:$0xff] }
  0x2a   : > { %2232 = vmatmul.mubr.msk.f32.vlgmr.msra.gmra.mrb[0].mxu0 %vm378_vm1, %v377_v18  ;;  %v2645_v63 = vpack.c.bf16 %v1955_v62, %v1954_v61  ;;  %v1959_v3 = vld [vmem:[%s3595_s3 + $0x108] sm:$0xff]  ;;  %v1960_v5 = vld [vmem:[%s3595_s3 + $0x110] sm:$0xff]  ;;  %v1961_v6 = vld [vmem:[%s3595_s3 + $0x118] sm:$0xff] }
  0x2b   : > { %2622 = vmatpush3.bf16.msra.mxu0 %v2594_v14  ;;  %2273 = vmatprep.mubr.msk.f32.mxu0 %vm2879_vm0, %v2880_v1  ;;  %v2651_v4 = vpack.c.bf16 %v1959_v3, %v1958_v2  ;;  %v2654_v7 = vpack.c.bf16 %v1961_v6, %v1960_v5  ;;  %v1962_v8 = vld [vmem:[%s3595_s3 + $0x120] sm:$0xff]  ;;  %v1963_v9 = vld [vmem:[%s3595_s3 + $0x128] sm:$0xff]  ;;  %v1964_v11 = vld [vmem:[%s3595_s3 + $0x130] sm:$0xff] }
  0x2c   : > { %2647 = vmatprep.subr.bf16.mxu0 %v2878_v0  ;;  %2607 = vmatpush3.bf16.msra.mxu1 %v2606_v19  ;;  %v2657_v10 = vpack.c.bf16 %v1963_v9, %v1962_v8  ;;  %v1965_v12 = vld [vmem:[%s3595_s3 + $0x138] sm:$0xff]  ;;  %v1967_v15 = vld [vmem:[%s3595_s3 + $0x148] sm:$0xff]  ;;  %v1968_v17 = vld [vmem:[%s3595_s3 + $0x150] sm:$0xff] }
  0x2d   : > { %2608 = vmatprep.subr.bf16.mxu1 %v2878_v0  ;;  %v2660_v13 = vpack.c.bf16 %v1965_v12, %v1964_v11  ;;  %v1969_v18 = vld [vmem:[%s3595_s3 + $0x158] sm:$0xff]  ;;  %v1970_v20 = vld [vmem:[%s3595_s3 + $0x160] sm:$0xff]  ;;  %v1971_v21 = vld [vmem:[%s3595_s3 + $0x168] sm:$0xff] }
  0x2e   : > { %2274 = vmatmul.mubr.msk.f32.vlgmr.msra.gmra.mrb[2].mxu0 %vm378_vm1, %v1938_v22  ;;  %v2666_v19 = vpack.c.bf16 %v1969_v18, %v1968_v17  ;;  %v2669_v22 = vpack.c.bf16 %v1971_v21, %v1970_v20  ;;  %v1973_v24 = vld [vmem:[%s3595_s3 + $0x178] sm:$0xff]  ;;  %v951_v31 = vld [vmem:[%s3598_s6] sm:$0xff]  ;;  %v952_v32 = vld [vmem:[%s3598_s6 + $0x8] sm:$0xff] }
  0x2f   : > { %2649 = vmatpush3.bf16.msra.mxu0 %v2594_v14  ;;  %2315 = vmatprep.mubr.msk.f32.mxu0 %vm2879_vm0, %v2880_v1  ;;  %v1966_v14 = vld [vmem:[%s3595_s3 + $0x140] sm:$0xff]  ;;  %v953_v37 = vld [vmem:[%s3598_s6 + $0x10] sm:$0xff]  ;;  %v954_v38 = vld [vmem:[%s3598_s6 + $0x18] sm:$0xff] }
  0x30   : > { %2353 = vmatprep.subr.mxu0 %v2880_v1  ;;  %2610 = vmatpush3.bf16.msra.mxu1 %v2609_v23  ;;  %v2663_v16 = vpack.c.bf16 %v1967_v15, %v1966_v14  ;;  %v1972_v23 = vld [vmem:[%s3595_s3 + $0x170] sm:$0xff]  ;;  %v3193_v35 = vld [vmem:[%s3597_s5] sm:$0xff]  ;;  %v960_v47 = vld [vmem:[%s3598_s6 + $0x48] sm:$0xff] }
  0x31   : > { %2611 = vmatprep.subr.bf16.mxu1 %v2878_v0  ;;  %v2672_v25 = vpack.c.bf16 %v1973_v24, %v1972_v23  ;;  %v957_v43 = vld [vmem:[%s3598_s6 + $0x30] sm:$0xff]  ;;  %v963_v52 = vld [vmem:[%s3598_s6 + $0x60] sm:$0xff]  ;;  %v964_v53 = vld [vmem:[%s3598_s6 + $0x68] sm:$0xff] }
  0x32   : > { %2316 = vmatmul.mubr.msk.f32.vlgmr.msra.gmra.mrb[4].mxu0 %vm378_vm1, %v1956_v26  ;;  %v1937_v26 = vld [vmem:[%s3596_s4] ss:$0 sm:$0xff]  ;;  %v965_v55 = vld [vmem:[%s3598_s6 + $0x70] sm:$0xff]  ;;  %v966_v56 = vld [vmem:[%s3598_s6 + $0x78] sm:$0xff] }
  0x33   : > { %2355 = vmatprep.mubr.msk.f32.mxu0 %vm2879_vm0, %v2880_v1  ;;  %v1978_v58 = vld [vmem:[%s3598_s6 + $0x80] sm:$0xff]  ;;  %v1979_v59 = vld [vmem:[%s3598_s6 + $0x88] sm:$0xff]  ;;  %v1980_v2 = vld [vmem:[%s3598_s6 + $0x90] sm:$0xff] }
  0x34   : > { %2613 = vmatpush3.bf16.msra.mxu1 %v2612_v27  ;;  %v3263_v62 = vld [vmem:[%s3597_s5 + $0x8] sm:$0xff]  ;;  %v1981_v3 = vld [vmem:[%s3598_s6 + $0x98] sm:$0xff]  ;;  %v1982_v5 = vld [vmem:[%s3598_s6 + $0xa0] sm:$0xff] }
  0x35   : > { %2614 = vmatprep.subr.bf16.mxu1 %v2878_v0  ;;  %v1983_v6 = vld [vmem:[%s3598_s6 + $0xa8] sm:$0xff]  ;;  %v1984_v8 = vld [vmem:[%s3598_s6 + $0xb0] sm:$0xff]  ;;  %v1985_v9 = vld [vmem:[%s3598_s6 + $0xb8] sm:$0xff] }
  0x36   : > { %v1986_v11 = vld [vmem:[%s3598_s6 + $0xc0] sm:$0xff]  ;;  %v1987_v12 = vld [vmem:[%s3598_s6 + $0xc8] sm:$0xff]  ;;  %v1988_v14 = vld [vmem:[%s3598_s6 + $0xd0] sm:$0xff] }
  0x37   : > { %v1989_v15 = vld [vmem:[%s3598_s6 + $0xd8] sm:$0xff]  ;;  %v1990_v17 = vld [vmem:[%s3598_s6 + $0xe0] sm:$0xff]  ;;  %v1991_v18 = vld [vmem:[%s3598_s6 + $0xe8] sm:$0xff] }
  0x38   : > { %2616 = vmatpush3.bf16.msra.mxu1 %v2615_v30  ;;  %v1992_v20 = vld [vmem:[%s3598_s6 + $0xf0] sm:$0xff]  ;;  %v1993_v21 = vld [vmem:[%s3598_s6 + $0xf8] sm:$0xff]  ;;  %v1996_v23 = vld [vmem:[%s3598_s6 + $0x100] sm:$0xff] }
  0x39   : > { %2617 = vmatprep.subr.bf16.mxu1 %v2878_v0  ;;  %v1997_v24 = vld [vmem:[%s3598_s6 + $0x108] sm:$0xff] }
  0x3c   : > { %2619 = vmatpush3.bf16.msra.mxu1 %v2618_v33 }
  0x3d   : > { %2623 = vmatprep.subr.bf16.mxu1 %v2878_v0 }
  0xfd   : > { %v448_v39 = vpop.f32.mrb[0].mxu0 }
  0xfe   : > { %v2233_v40 = vpop.f32.mrb[1].mxu0  ;;  %2267 = vmatmul.mubr.f32.vlgmr.msra.gmra.mrb[0].mxu1 %v448_v39  ;;  %v2678_v39 = vpack.c.bf16 %v954_v38, %v953_v37  ;;  %v2002_v37 = vld [vmem:[%s3598_s6 + $0x130] sm:$0xff]  ;;  %v2003_v38 = vld [vmem:[%s3598_s6 + $0x138] sm:$0xff] }
  0xff   : > { %2625 = vmatpush3.bf16.msra.mxu1 %v2624_v36  ;;  %2308 = vmatprep.mubr.msk.f32.mxu1 %vm2879_vm0, %v2880_v1  ;;  %v2675_v36 = vpack.c.bf16 %v952_v32, %v951_v31  ;;  %v955_v40 = vld [vmem:[%s3598_s6 + $0x20] sm:$0xff]  ;;  %v1999_v31 = vld [vmem:[%s3598_s6 + $0x118] sm:$0xff] }
 0x100   : > { %2626 = vmatprep.subr.bf16.mxu1 %v2878_v0 }
 0x101   : > { %v616_v44 = vpop.f32.mrb[2].mxu0 }
 0x102   : > { %v2275_v45 = vpop.f32.mrb[3].mxu0 }
 0x103   : > { %2628 = vmatpush3.bf16.msra.mxu1 %v2627_v41  ;;  %v956_v41 = vld [vmem:[%s3598_s6 + $0x28] sm:$0xff] }
 0x104   : > { %2629 = vmatprep.subr.bf16.mxu1 %v2878_v0  ;;  %v2681_v42 = vpack.c.bf16 %v956_v41, %v955_v40  ;;  %v2004_v40 = vld [vmem:[%s3598_s6 + $0x140] sm:$0xff]  ;;  %v2005_v41 = vld [vmem:[%s3598_s6 + $0x148] sm:$0xff] }
 0x105   : > { %v3083_v49 = vpop.f32.mrb[4].mxu0 }
 0x106   : > { %v2317_v50 = vpop.f32.mrb[5].mxu0 }
 0x107   : > { %2631 = vmatpush3.bf16.msra.mxu1 %v2630_v46  ;;  %v959_v46 = vld [vmem:[%s3598_s6 + $0x40] sm:$0xff]  ;;  %v962_v50 = vld [vmem:[%s3598_s6 + $0x58] sm:$0xff] }
 0x108   : > { %2632 = vmatprep.subr.bf16.mxu1 %v2878_v0  ;;  %v2687_v48 = vpack.c.bf16 %v960_v47, %v959_v46  ;;  %v2008_v46 = vld [vmem:[%s3598_s6 + $0x160] sm:$0xff]  ;;  %v2009_v47 = vld [vmem:[%s3598_s6 + $0x168] sm:$0xff] }
 0x10b   : > { %2634 = vmatpush3.bf16.msra.mxu1 %v2633_v51 }
 0x10c   : > { %2635 = vmatprep.subr.bf16.mxu1 %v2878_v0 }
 0x10f   : > { %2637 = vmatpush3.bf16.msra.mxu1 %v2636_v54  ;;  %v2693_v54 = vpack.c.bf16 %v964_v53, %v963_v52 }
 0x110   : > { %2638 = vmatprep.subr.bf16.mxu1 %v2878_v0 }
 0x113   : > { %2640 = vmatpush3.bf16.msra.mxu1 %v2639_v57  ;;  %v2696_v57 = vpack.c.bf16 %v966_v56, %v965_v55  ;;  %v1450_v55 = vld [vmem:[%s3600_s8 + $0x8] sm:$0xff]  ;;  %v1451_v56 = vld [vmem:[%s3600_s8 + $0x10] sm:$0xff] }
 0x114   : > { %2641 = vmatprep.subr.bf16.mxu1 %v2878_v0 }
 0x117   : > { %2643 = vmatpush3.bf16.msra.mxu1 %v2642_v60 }
 0x118   : > { %2644 = vmatprep.subr.bf16.mxu1 %v2878_v0 }
 0x11b   : > { %2646 = vmatpush3.bf16.msra.mxu1 %v2645_v63  ;;  %v2699_v63 = vpack.c.bf16 %v1979_v59, %v1978_v58  ;;  %v1452_v58 = vld [vmem:[%s3600_s8 + $0x18] sm:$0xff] }
 0x11c   : > { %2650 = vmatprep.subr.bf16.mxu1 %v2878_v0  ;;  %v2750_v59 = vpack.c.bf16 %v1452_v58, %v1451_v56  ;;  %v2036_v56 = vld [vmem:[%s3600_s8 + $0x110] sm:$0xff] }
 0x11e   : > { %2309 = vmatmul.mubr.f32.vlgmr.msra.gmra.mrb[0].mxu1 %v616_v44  ;;  %v958_v44 = vld [vmem:[%s3598_s6 + $0x38] sm:$0xff] }
 0x11f   : > { %2652 = vmatpush3.bf16.msra.mxu1 %v2651_v4  ;;  %2350 = vmatprep.mubr.msk.f32.mxu1 %vm2879_vm0, %v2880_v1  ;;  %v2684_v45 = vpack.c.bf16 %v958_v44, %v957_v43  ;;  %v2702_v4 = vpack.c.bf16 %v1981_v3, %v1980_v2  ;;  %v2006_v43 = vld [vmem:[%s3598_s6 + $0x150] sm:$0xff]  ;;  %v2007_v44 = vld [vmem:[%s3598_s6 + $0x158] sm:$0xff] }
 0x120   : > { %2653 = vmatprep.subr.bf16.mxu1 %v2878_v0  ;;  %v1455_v2 = vld [vmem:[%s3600_s8 + $0x30] sm:$0xff]  ;;  %v1456_v3 = vld [vmem:[%s3600_s8 + $0x38] sm:$0xff] }
 0x123   : > { %2655 = vmatpush3.bf16.msra.mxu1 %v2654_v7  ;;  %v2705_v7 = vpack.c.bf16 %v1983_v6, %v1982_v5  ;;  %v1457_v5 = vld [vmem:[%s3600_s8 + $0x40] sm:$0xff]  ;;  %v1458_v6 = vld [vmem:[%s3600_s8 + $0x48] sm:$0xff] }
 0x124   : > { %2656 = vmatprep.subr.bf16.mxu1 %v2878_v0 }
 0x127   : > { %2658 = vmatpush3.bf16.msra.mxu1 %v2657_v10  ;;  %v2708_v10 = vpack.c.bf16 %v1985_v9, %v1984_v8  ;;  %v1459_v8 = vld [vmem:[%s3600_s8 + $0x50] sm:$0xff]  ;;  %v1460_v9 = vld [vmem:[%s3600_s8 + $0x58] sm:$0xff] }
 0x128   : > { %2659 = vmatprep.subr.bf16.mxu1 %v2878_v0 }
 0x12b   : > { %2661 = vmatpush3.bf16.msra.mxu1 %v2660_v13  ;;  %v2711_v13 = vpack.c.bf16 %v1987_v12, %v1986_v11  ;;  %v1461_v11 = vld [vmem:[%s3600_s8 + $0x60] sm:$0xff]  ;;  %v1462_v12 = vld [vmem:[%s3600_s8 + $0x68] sm:$0xff] }
 0x12c   : > { %2662 = vmatprep.subr.bf16.mxu1 %v2878_v0 }
 0x12f   : > { %2664 = vmatpush3.bf16.msra.mxu1 %v2663_v16  ;;  %v2714_v16 = vpack.c.bf16 %v1989_v15, %v1988_v14  ;;  %v1463_v14 = vld [vmem:[%s3600_s8 + $0x70] sm:$0xff]  ;;  %v1464_v15 = vld [vmem:[%s3600_s8 + $0x78] sm:$0xff] }
 0x130   : > { %2665 = vmatprep.subr.bf16.mxu1 %v2878_v0 }
 0x133   : > { %2667 = vmatpush3.bf16.msra.mxu1 %v2666_v19  ;;  %v2717_v19 = vpack.c.bf16 %v1991_v18, %v1990_v17  ;;  %v1975_v17 = vld [vmem:[%s3599_s7] ss:$0 sm:$0xff]  ;;  %v1371_v18 = vstv %s2012_s30 }
 0x134   : > { %2668 = vmatprep.subr.bf16.mxu1 %v2878_v0 }
 0x137   : > { %2670 = vmatpush3.bf16.msra.mxu1 %v2669_v22  ;;  %v2720_v22 = vpack.c.bf16 %v1993_v21, %v1992_v20  ;;  %v1374_v20 = vstv %s2013_s11  ;;  %s371_s11 = scalar_lea.vmem %s3602_s10, %s1935_s28 }
 0x138   : > { %2671 = vmatprep.subr.bf16.mxu1 %v2878_v0 }
 0x13b   : > { %2673 = vmatpush3.bf16.msra.mxu1 %v2672_v25 }
 0x13c   : > { %2746 = vmatprep.subr.bf16.mxu1 %v2878_v0 }
 0x13e   : > { %2351 = vmatmul.mubr.f32.vlgmr.msra.gmra.mrb[0].mxu1 %v3083_v49  ;;  %v961_v49 = vld [vmem:[%s3598_s6 + $0x50] sm:$0xff] }
 0x13f   : > { %2510 = vmatprep.mubr.msk.f32.mxu1 %vm2879_vm0, %v2880_v1  ;;  %v2690_v51 = vpack.c.bf16 %v962_v50, %v961_v49  ;;  %v2010_v49 = vld [vmem:[%s3598_s6 + $0x170] sm:$0xff]  ;;  %v2011_v50 = vld [vmem:[%s3598_s6 + $0x178] sm:$0xff] }
 0x211   : > { %v866_v27 = vpop.f32.mrb[0].mxu1 }
 0x212   : > { %v3179_v29 = vadd.f32 %v1937_v26, %v866_v27  ;;  %v2352_v30 = vpop.f32.mrb[1].mxu1  ;;  %v3332_v27 = vld [vmem:[%s3597_s5 + $0x10] sm:$0xff] }
 0x213   : > { %v1998_v30 = vld [vmem:[%s3598_s6 + $0x110] sm:$0xff] }
 0x214   : > { %v873_v33 = vmul.f32 %v3179_v29, %v872_v28  ;;  %v2723_v28 = vpack.c.bf16 %v1997_v24, %v1996_v23  ;;  %v2726_v32 = vpack.c.bf16 %v1999_v31, %v1998_v30  ;;  %v1372_v23 = vmul.f32 %v3179_v29, %v1371_v18  ;;  %v2018_v30 = vld [vmem:[%s3600_s8 + $0x88] sm:$0xff]  ;;  %v2019_v31 = vld [vmem:[%s3600_s8 + $0x90] sm:$0xff] }
 0x216   : > { %v3188_v34 = vmax.f32 %v873_v33, 0.0  ;;  %v2000_v33 = vld [vmem:[%s3598_s6 + $0x120] sm:$0xff] }
 0x218   : > { %2354 = vmatpush3.msra.mxu0 %v3188_v34 }
 0x219   : > { %2356 = vmatmul.mubr.msk.f32.vlgmr.msra.gmra.mrb[6].mxu0 %vm877_vm2, %v3193_v35  ;;  %2674 = vmatprep.subr.bf16.mxu0 %v2878_v0 }
 0x21a   : > { %2676 = vmatpush3.bf16.msra.mxu0 %v2675_v36  ;;  %2390 = vmatprep.mubr.msk.f32.mxu0 %vm2879_vm0, %v2880_v1 }
 0x21b   : > { %2677 = vmatprep.subr.bf16.mxu0 %v2878_v0 }
 0x21e   : > { %2679 = vmatpush3.bf16.msra.mxu0 %v2678_v39  ;;  %v2732_v39 = vpack.c.bf16 %v2003_v38, %v2002_v37  ;;  %v2024_v37 = vld [vmem:[%s3600_s8 + $0xb8] sm:$0xff] }
 0x21f   : > { %2680 = vmatprep.subr.bf16.mxu0 %v2878_v0 }
 0x222   : > { %2682 = vmatpush3.bf16.msra.mxu0 %v2681_v42  ;;  %v2735_v42 = vpack.c.bf16 %v2005_v41, %v2004_v40  ;;  %v2026_v40 = vld [vmem:[%s3600_s8 + $0xc8] sm:$0xff] }
 0x223   : > { %2683 = vmatprep.subr.bf16.mxu0 %v2878_v0 }
 0x226   : > { %2685 = vmatpush3.bf16.msra.mxu0 %v2684_v45  ;;  %v2738_v45 = vpack.c.bf16 %v2007_v44, %v2006_v43  ;;  %v2028_v43 = vld [vmem:[%s3600_s8 + $0xd8] sm:$0xff] }
 0x227   : > { %2686 = vmatprep.subr.bf16.mxu0 %v2878_v0 }
 0x22a   : > { %2688 = vmatpush3.bf16.msra.mxu0 %v2687_v48  ;;  %v2741_v48 = vpack.c.bf16 %v2009_v47, %v2008_v46  ;;  %v2030_v46 = vld [vmem:[%s3600_s8 + $0xe8] sm:$0xff] }
 0x22b   : > { %2689 = vmatprep.subr.bf16.mxu0 %v2878_v0 }
 0x22e   : > { %2691 = vmatpush3.bf16.msra.mxu0 %v2690_v51  ;;  %v2744_v51 = vpack.c.bf16 %v2011_v50, %v2010_v49  ;;  %v2032_v49 = vld [vmem:[%s3600_s8 + $0xf8] sm:$0xff] }
 0x22f   : > { %2692 = vmatprep.subr.bf16.mxu0 %v2878_v0 }
 0x232   : > { %2694 = vmatpush3.bf16.msra.mxu0 %v2693_v54  ;;  %v1449_v54 = vld [vmem:[%s3600_s8] sm:$0xff] }
 0x233   : > { %2695 = vmatprep.subr.bf16.mxu0 %v2878_v0 }
 0x236   : > { %2697 = vmatpush3.bf16.msra.mxu0 %v2696_v57  ;;  %v2747_v57 = vpack.c.bf16 %v1450_v55, %v1449_v54 }
 0x237   : > { %2393 = vmatprep.subr.mxu0 %v2880_v1 }
 0x238   : > { %2748 = vmatpush3.bf16.msra.mxu1 %v2747_v57  ;;  %v2037_v57 = vld [vmem:[%s3600_s8 + $0x118] sm:$0xff] }
 0x239   : > { %2749 = vmatprep.subr.bf16.mxu1 %v2878_v0 }
 0x23c   : > { %2751 = vmatpush3.bf16.msra.mxu1 %v2750_v59 }
 0x23d   : > { %2752 = vmatprep.subr.bf16.mxu1 %v2878_v0 }
 0x2ec   : > { %v947_v60 = vpop.f32.mrb[6].mxu0 }
 0x2ed   : > { %v2357_v61 = vpop.f32.mrb[7].mxu0  ;;  %2391 = vmatmul.mubr.f32.vlgmr.msra.gmra.mrb[8].mxu0 %v947_v60  ;;  %v1453_v60 = vld [vmem:[%s3600_s8 + $0x20] sm:$0xff] }
 0x2ee   : > { %2394 = vmatpush3.msra.mxu0 %v3188_v34  ;;  %2395 = vmatprep.mubr.msk.f32.mxu0 %vm2879_vm0, %v2880_v1  ;;  %v1454_v61 = vld [vmem:[%s3600_s8 + $0x28] sm:$0xff] }
 0x2ef   : > { %2698 = vmatprep.subr.bf16.mxu0 %v2878_v0 }
 0x2f1   : > { %2396 = vmatmul.mubr.msk.f32.vlgmr.msra.gmra.mrb[10].mxu0 %vm877_vm2, %v3263_v62 }
 0x2f2   : > { %2700 = vmatpush3.bf16.msra.mxu0 %v2699_v63  ;;  %2430 = vmatprep.mubr.msk.f32.mxu0 %vm2879_vm0, %v2880_v1  ;;  %v2753_v63 = vpack.c.bf16 %v1454_v61, %v1453_v60  ;;  %v2798_v60 = vpack.c.bf16 %v2037_v57, %v2036_v56  ;;  %v2038_v61 = vld [vmem:[%s3600_s8 + $0x120] sm:$0xff] }
 0x2f3   : > { %2701 = vmatprep.subr.bf16.mxu0 %v2878_v0 }
 0x2f4   : > { %2754 = vmatpush3.bf16.msra.mxu1 %v2753_v63  ;;  %v2039_v63 = vld [vmem:[%s3600_s8 + $0x128] sm:$0xff] }
 0x2f5   : > { %2755 = vmatprep.subr.bf16.mxu1 %v2878_v0 }
 0x2f6   : > { %2703 = vmatpush3.bf16.msra.mxu0 %v2702_v4  ;;  %v2756_v4 = vpack.c.bf16 %v1456_v3, %v1455_v2  ;;  %v2801_v2 = vpack.c.bf16 %v2039_v63, %v2038_v61 }
 0x2f7   : > { %2704 = vmatprep.subr.bf16.mxu0 %v2878_v0 }
 0x2f8   : > { %2757 = vmatpush3.bf16.msra.mxu1 %v2756_v4  ;;  %v2042_v4 = vld [vmem:[%s3600_s8 + $0x140] sm:$0xff] }
 0x2f9   : > { %2758 = vmatprep.subr.bf16.mxu1 %v2878_v0 }
 0x2fa   : > { %2706 = vmatpush3.bf16.msra.mxu0 %v2705_v7  ;;  %v2759_v7 = vpack.c.bf16 %v1458_v6, %v1457_v5  ;;  %v2043_v5 = vld [vmem:[%s3600_s8 + $0x148] sm:$0xff] }
 0x2fb   : > { %2707 = vmatprep.subr.bf16.mxu0 %v2878_v0  ;;  %v2807_v6 = vpack.c.bf16 %v2043_v5, %v2042_v4 }
 0x2fc   : > { %2760 = vmatpush3.bf16.msra.mxu1 %v2759_v7  ;;  %v2044_v7 = vld [vmem:[%s3600_s8 + $0x150] sm:$0xff] }
 0x2fd   : > { %2761 = vmatprep.subr.bf16.mxu1 %v2878_v0 }
 0x2fe   : > { %2709 = vmatpush3.bf16.msra.mxu0 %v2708_v10  ;;  %v2762_v10 = vpack.c.bf16 %v1460_v9, %v1459_v8  ;;  %v2045_v8 = vld [vmem:[%s3600_s8 + $0x158] sm:$0xff] }
 0x2ff   : > { %2710 = vmatprep.subr.bf16.mxu0 %v2878_v0  ;;  %v2810_v9 = vpack.c.bf16 %v2045_v8, %v2044_v7 }
 0x300   : > { %2763 = vmatpush3.bf16.msra.mxu1 %v2762_v10  ;;  %v2046_v10 = vld [vmem:[%s3600_s8 + $0x160] sm:$0xff] }
 0x301   : > { %2764 = vmatprep.subr.bf16.mxu1 %v2878_v0 }
 0x302   : > { %2712 = vmatpush3.bf16.msra.mxu0 %v2711_v13  ;;  %v2765_v13 = vpack.c.bf16 %v1462_v12, %v1461_v11  ;;  %v2047_v11 = vld [vmem:[%s3600_s8 + $0x168] sm:$0xff] }
 0x303   : > { %2713 = vmatprep.subr.bf16.mxu0 %v2878_v0  ;;  %v2813_v12 = vpack.c.bf16 %v2047_v11, %v2046_v10 }
 0x304   : > { %2766 = vmatpush3.bf16.msra.mxu1 %v2765_v13  ;;  %v2048_v13 = vld [vmem:[%s3600_s8 + $0x170] sm:$0xff] }
 0x305   : > { %2767 = vmatprep.subr.bf16.mxu1 %v2878_v0 }
 0x306   : > { %2715 = vmatpush3.bf16.msra.mxu0 %v2714_v16  ;;  %v2768_v16 = vpack.c.bf16 %v1464_v15, %v1463_v14  ;;  %v2049_v14 = vld [vmem:[%s3600_s8 + $0x178] sm:$0xff] }
 0x307   : > { %2716 = vmatprep.subr.bf16.mxu0 %v2878_v0  ;;  %v2816_v15 = vpack.c.bf16 %v2049_v14, %v2048_v13 }
 0x308   : > { %2769 = vmatpush3.bf16.msra.mxu1 %v2768_v16  ;;  %v2015_v16 = vld [vmem:[%s3601_s9] ss:$0 sm:$0xff] }
 0x309   : > { %2553 = vmatprep.subr.mxu1 %v2880_v1 }
 0x30a   : > { %2718 = vmatpush3.bf16.msra.mxu0 %v2717_v19 }
 0x30b   : > { %2719 = vmatprep.subr.bf16.mxu0 %v2878_v0 }
 0x30e   : > { %2721 = vmatpush3.bf16.msra.mxu0 %v2720_v22 }
 0x30f   : > { %2433 = vmatprep.subr.mxu0 %v2880_v1 }
 0x3c4   : > { %v1115_v25 = vpop.f32.mrb[10].mxu0 }
 0x3c5   : > { %v2397_v26 = vpop.f32.mrb[11].mxu0  ;;  %2431 = vmatmul.mubr.f32.vlgmr.msra.gmra.mrb[8].mxu0 %v1115_v25 }
 0x3c6   : > { %2434 = vmatpush3.msra.mxu0 %v3188_v34  ;;  %2435 = vmatprep.mubr.msk.f32.mxu0 %vm2879_vm0, %v2880_v1  ;;  %v2001_v34 = vld [vmem:[%s3598_s6 + $0x128] sm:$0xff] }
 0x3c7   : > { %2722 = vmatprep.subr.bf16.mxu0 %v2878_v0  ;;  %v2729_v36 = vpack.c.bf16 %v2001_v34, %v2000_v33  ;;  %v2021_v33 = vld [vmem:[%s3600_s8 + $0xa0] sm:$0xff]  ;;  %v2022_v34 = vld [vmem:[%s3600_s8 + $0xa8] sm:$0xff] }
 0x3c9   : > { %2436 = vmatmul.mubr.msk.f32.vlgmr.msra.gmra.mrb[12].mxu0 %vm877_vm2, %v3332_v27 }
 0x3ca   : > { %2724 = vmatpush3.bf16.msra.mxu0 %v2723_v28  ;;  %2470 = vmatprep.mubr.msk.f32.mxu0 %vm2879_vm0, %v2880_v1  ;;  %v2017_v28 = vld [vmem:[%s3600_s8 + $0x80] sm:$0xff] }
 0x3cb   : > { %2725 = vmatprep.subr.bf16.mxu0 %v2878_v0  ;;  %v2771_v29 = vpack.c.bf16 %v2018_v30, %v2017_v28 }
 0x3ce   : > { %2727 = vmatpush3.bf16.msra.mxu0 %v2726_v32  ;;  %v2020_v32 = vld [vmem:[%s3600_s8 + $0x98] sm:$0xff] }
 0x3cf   : > { %2728 = vmatprep.subr.bf16.mxu0 %v2878_v0 }
 0x3d2   : > { %2730 = vmatpush3.bf16.msra.mxu0 %v2729_v36  ;;  %v2777_v36 = vpack.c.bf16 %v2022_v34, %v2021_v33 }
 0x3d3   : > { %2731 = vmatprep.subr.bf16.mxu0 %v2878_v0 }
 0x3d6   : > { %2733 = vmatpush3.bf16.msra.mxu0 %v2732_v39  ;;  %v2025_v39 = vld [vmem:[%s3600_s8 + $0xc0] sm:$0xff] }
 0x3d7   : > { %2734 = vmatprep.subr.bf16.mxu0 %v2878_v0  ;;  %v2783_v41 = vpack.c.bf16 %v2026_v40, %v2025_v39 }
 0x3da   : > { %2736 = vmatpush3.bf16.msra.mxu0 %v2735_v42  ;;  %v2027_v42 = vld [vmem:[%s3600_s8 + $0xd0] sm:$0xff] }
 0x3db   : > { %2737 = vmatprep.subr.bf16.mxu0 %v2878_v0  ;;  %v2786_v44 = vpack.c.bf16 %v2028_v43, %v2027_v42 }
 0x3de   : > { %2739 = vmatpush3.bf16.msra.mxu0 %v2738_v45  ;;  %v2029_v45 = vld [vmem:[%s3600_s8 + $0xe0] sm:$0xff] }
 0x3df   : > { %2740 = vmatprep.subr.bf16.mxu0 %v2878_v0  ;;  %v2789_v47 = vpack.c.bf16 %v2030_v46, %v2029_v45 }
 0x3e2   : > { %2742 = vmatpush3.bf16.msra.mxu0 %v2741_v48  ;;  %v2031_v48 = vld [vmem:[%s3600_s8 + $0xf0] sm:$0xff] }
 0x3e3   : > { %2743 = vmatprep.subr.bf16.mxu0 %v2878_v0  ;;  %v2792_v50 = vpack.c.bf16 %v2032_v49, %v2031_v48 }
 0x3e6   : > { %2745 = vmatpush3.bf16.msra.mxu0 %v2744_v51  ;;  %v2034_v51 = vld [vmem:[%s3600_s8 + $0x100] sm:$0xff] }
 0x3e7   : > { %2473 = vmatprep.subr.mxu0 %v2880_v1 }
 0x49c   : > { %v1278_v52 = vpop.f32.mrb[12].mxu0 }
 0x49d   : > { %v2437_v53 = vpop.f32.mrb[13].mxu0  ;;  %2471 = vmatmul.mubr.f32.vlgmr.msra.gmra.mrb[8].mxu0 %v1278_v52  ;;  %v2035_v52 = vld [vmem:[%s3600_s8 + $0x108] sm:$0xff] }
 0x49e   : > { %2475 = vmatprep.mubr.msk.f32.mxu0 %vm2879_vm0, %v2880_v1  ;;  %v2795_v55 = vpack.c.bf16 %v2035_v52, %v2034_v51 }
 0x570   : > { %v1365_v19 = vpop.f32.mrb[8].mxu0 }
 0x571   : > { %v3450_v21 = vadd.f32 %v1975_v17, %v1365_v19  ;;  %v2472_v22 = vpop.f32.mrb[9].mxu0 }
 0x573   : > { %v1375_v24 = vmul.f32 %v3450_v21, %v1374_v20 }
 0x575   : > { %v1376_v25 = vadd.f32 %v1375_v24, %v1372_v23 }
 0x577   : > { %v1377_v26 = vmax.f32 %v1376_v25, 0.0 }
 0x579   : > { %2474 = vmatpush3.msra.mxu0 %v1377_v26 }
 0x57a   : > { %2476 = vmatmul.mubr.msk.f32.vlgmr.msra.gmra.mrb[14].mxu0 %vm877_vm2, %v3193_v35  ;;  %2513 = vmatprep.subr.mxu0 %v2880_v1  ;;  %v2774_v35 = vpack.c.bf16 %v2020_v32, %v2019_v31 }
 0x57b   : > { %2514 = vmatpush3.msra.mxu0 %v1377_v26  ;;  %2515 = vmatprep.mubr.msk.f32.mxu0 %vm2879_vm0, %v2880_v1 }
 0x57c   : > { %2770 = vmatprep.subr.bf16.mxu0 %v2878_v0 }
 0x57e   : > { %2516 = vmatmul.mubr.msk.f32.vlgmr.msra.gmra.mrb[16].mxu0 %vm877_vm2, %v3263_v62  ;;  %v2023_v62 = vld [vmem:[%s3600_s8 + $0xb0] sm:$0xff] }
 0x57f   : > { %2772 = vmatpush3.bf16.msra.mxu0 %v2771_v29  ;;  %2550 = vmatprep.mubr.msk.f32.mxu0 %vm2879_vm0, %v2880_v1  ;;  %v2780_v38 = vpack.c.bf16 %v2024_v37, %v2023_v62 }
 0x580   : > { %2773 = vmatprep.subr.bf16.mxu0 %v2878_v0 }
 0x583   : > { %2775 = vmatpush3.bf16.msra.mxu0 %v2774_v35 }
 0x584   : > { %2776 = vmatprep.subr.bf16.mxu0 %v2878_v0 }
 0x587   : > { %2778 = vmatpush3.bf16.msra.mxu0 %v2777_v36 }
 0x588   : > { %2779 = vmatprep.subr.bf16.mxu0 %v2878_v0 }
 0x58b   : > { %2781 = vmatpush3.bf16.msra.mxu0 %v2780_v38 }
 0x58c   : > { %2782 = vmatprep.subr.bf16.mxu0 %v2878_v0 }
 0x58f   : > { %2784 = vmatpush3.bf16.msra.mxu0 %v2783_v41 }
 0x590   : > { %2785 = vmatprep.subr.bf16.mxu0 %v2878_v0 }
 0x593   : > { %2787 = vmatpush3.bf16.msra.mxu0 %v2786_v44 }
 0x594   : > { %2788 = vmatprep.subr.bf16.mxu0 %v2878_v0 }
 0x597   : > { %2790 = vmatpush3.bf16.msra.mxu0 %v2789_v47 }
 0x598   : > { %2791 = vmatprep.subr.bf16.mxu0 %v2878_v0 }
 0x59b   : > { %2793 = vmatpush3.bf16.msra.mxu0 %v2792_v50 }
 0x64d   : > { %v1445_v53 = vpop.f32.mrb[14].mxu0 }
 0x64e   : > { %2511 = vmatmul.mubr.f32.vlgmr.msra.gmra.mrb[2].mxu1 %v1445_v53  ;;  %v2477_v54 = vpop.f32.mrb[15].mxu0 }
 0x64f   : > { %2554 = vmatpush3.msra.mxu1 %v1377_v26  ;;  %2555 = vmatprep.mubr.msk.f32.mxu1 %vm2879_vm0, %v2880_v1 }
 0x650   : > { %2794 = vmatprep.subr.bf16.mxu1 %v2878_v0 }
 0x651   : > { %v1608_v58 = vpop.f32.mrb[16].mxu0 }
 0x652   : > { %2556 = vmatmul.mubr.msk.f32.vlgmr.msra.gmra.mrb[4].mxu1 %vm877_vm2, %v3332_v27  ;;  %2551 = vmatmul.mubr.f32.vlgmr.msra.gmra.mrb[18].mxu0 %v1608_v58  ;;  %v2517_v59 = vpop.f32.mrb[17].mxu0  ;;  %v2040_v27 = vld [vmem:[%s3600_s8 + $0x130] sm:$0xff] }
 0x653   : > { %2796 = vmatpush3.bf16.msra.mxu1 %v2795_v55  ;;  %2590 = vmatprep.mubr.msk.f32.mxu1 %vm2879_vm0, %v2880_v1  ;;  %v2041_v1 = vld [vmem:[%s3600_s8 + $0x138] sm:$0xff] }
 0x654   : > { %2797 = vmatprep.subr.bf16.mxu1 %v2878_v0  ;;  %v2804_v3 = vpack.c.bf16 %v2041_v1, %v2040_v27 }
 0x657   : > { %2799 = vmatpush3.bf16.msra.mxu1 %v2798_v60 }
 0x658   : > { %2800 = vmatprep.subr.bf16.mxu1 %v2878_v0 }
 0x65b   : > { %2802 = vmatpush3.bf16.msra.mxu1 %v2801_v2 }
 0x65c   : > { %2803 = vmatprep.subr.bf16.mxu1 %v2878_v0 }
 0x65f   : > { %2805 = vmatpush3.bf16.msra.mxu1 %v2804_v3 }
 0x660   : > { %2806 = vmatprep.subr.bf16.mxu1 %v2878_v0 }
 0x663   : > { %2808 = vmatpush3.bf16.msra.mxu1 %v2807_v6 }
 0x664   : > { %2809 = vmatprep.subr.bf16.mxu1 %v2878_v0 }
 0x667   : > { %2811 = vmatpush3.bf16.msra.mxu1 %v2810_v9 }
 0x668   : > { %2812 = vmatprep.subr.bf16.mxu1 %v2878_v0 }
 0x66b   : > { %2814 = vmatpush3.bf16.msra.mxu1 %v2813_v12 }
 0x66c   : > { %2815 = vmatprep.subr.bf16.mxu1 %v2878_v0 }
 0x66f   : > { %2817 = vmatpush3.bf16.msra.mxu1 %v2816_v15 }
 0x721   : > { %v1531_v17 = vpop.f32.mrb[2].mxu1 }
 0x722   : > { %v2512_v18 = vpop.f32.mrb[3].mxu1  ;;  %v1541_v19 = vadd.f32 %v2015_v16, %v1531_v17 }
 0x725   : > { %v1766_v20 = vpop.f32.mrb[4].mxu1  ;;  %v1695_v0 = vpop.f32.mrb[18].mxu0 }
 0x726   : > { %v1699_v22 = vadd.f32 %v1695_v0, %v1541_v19  ;;  %2591 = vmatmul.mubr.f32.vlgmr.msra.gmra.mrb[6].mxu1 %v1766_v20  ;;  %v2557_v23 = vpop.f32.mrb[5].mxu1  ;;  %v2552_v24 = vpop.f32.mrb[19].mxu0 }
 0x7f9   : > { %v1853_v25 = vpop.f32.mrb[6].mxu1 }
 0x7fa   : > { %v1857_v26 = vadd.f32 %v1853_v25, %v1699_v22  ;;  %v2592_v28 = vpop.f32.mrb[7].mxu1 }
 0x7fc   : > { %v1858_v30 = vadd.f32 %v3450_v21, %v1857_v26 }
 0x7fe   : > { %v1859_v29 = vmul.f32 0.5, %v1858_v30 }
 0x800   : > { %1860 = vst [vmem:[%s371_s11] sm:$0xff] %v1859_v29 }
 0x801 PF: > { %s21_s13 = sadd.s32 1, %s2875_s13  }
 0x802   : > { %p18_p1 = scmp.ge.s32.totalorder %s21_s13, 4  }
 0x804   :  { %20 = sbr.rel (!%p18_p1) target bundleno = 1 (0x1), region = 105 }
 0x80b   :  { %1880 = vsyncpa [#allocation3], 1 }
 0x80c   :  { %1882 = vsyncpa [#allocation3 + $0x1], 1 }

</bundles_post_ra>
